<compile_context>
chip_gen: v7x
topology: tpu7x:2x2x1
jax: 0.10.0
libtpu: 0.0.40
codegen_flags: <defaults>
</compile_context>

<pallas_src>
import functools

import jax
import jax.numpy as jnp
from jax import lax
from jax.experimental import pallas as pl
from jax.experimental.pallas import tpu as pltpu


def _round_up(x, m):
    return (x + m - 1) // m * m


def _choose_tiles(n):
    """Pad N and pick (query, key) row tiles.

    Small N -> a single full tile (padded to a multiple of 16 for bf16
    sublane packing).  Large N -> 128/256-row query tiles and up-to-512-row
    key tiles for the flash loop, with N padded to a multiple of 128 so all
    blocks are lane-dense.
    """
    if n <= 256:
        npad = _round_up(n, 16)
        return npad, npad, npad
    npad = _round_up(n, 128)
    tq = 256 if npad % 256 == 0 else 128
    if npad % 512 == 0:
        tk = 512
    elif npad % 256 == 0:
        tk = 256
    else:
        tk = 128
    return npad, tq, tk


# ----------------------------------------------------------------------------
# Kernel 1: fused theta|phi|g embedding straight from the channels-first tile.
# ----------------------------------------------------------------------------
def _qkv_kernel(x_ref, w_ref, b_ref, th_ref, ph_ref, g_ref, *, ep):
    # x_ref: (Cp, tn) f32 channels-first tile; w_ref: (Cp, 3*Ep) compute dtype;
    # b_ref: (1, 3*Ep) f32.  Contract the channel axis of both operands
    # (dim 0 / dim 0) on the MXU -> (tn, 3*Ep) f32, then add bias and split.
    x = x_ref[...].astype(w_ref.dtype)
    qkv = lax.dot_general(x, w_ref[...], (((0,), (0,)), ((), ())),
                          preferred_element_type=jnp.float32) + b_ref[...]
    th_ref[...] = qkv[:, :ep].astype(th_ref.dtype)
    ph_ref[...] = qkv[:, ep:2 * ep].astype(ph_ref.dtype)
    g_ref[...] = qkv[:, 2 * ep:].astype(g_ref.dtype)


# ----------------------------------------------------------------------------
# Kernel 2: flash-style attention + BN-folded projection + residual.
# ----------------------------------------------------------------------------
def _attn_kernel(th_ref, ph_ref, g_ref, x_ref, w_ref, b_ref, o_ref,
                 m_sc, l_sc, acc_sc, *, n_valid, tk, mask_keys):
    ki = pl.program_id(2)

    @pl.when(ki == 0)
    def _():
        m_sc[...] = jnp.full_like(m_sc, -jnp.inf)
        l_sc[...] = jnp.zeros_like(l_sc)
        acc_sc[...] = jnp.zeros_like(acc_sc)

    # scores[q, k] = sum_e theta[q, e] * phi[k, e]   (MXU consumes the
    # transposed RHS natively; 1/sqrt(E) already folded into theta).
    s = lax.dot_general(th_ref[...], ph_ref[...], (((1,), (1,)), ((), ())),
                        preferred_element_type=jnp.float32)        # (tq, tk)
    if mask_keys:
        kidx = ki * tk + lax.broadcasted_iota(jnp.int32, s.shape, 1)
        s = jnp.where(kidx < n_valid, s, -1e30)

    m_prev = m_sc[...]
    m_new = jnp.maximum(m_prev, jnp.max(s, axis=-1, keepdims=True))
    alpha = jnp.exp(m_prev - m_new)
    p = jnp.exp(s - m_new)
    l_sc[...] = alpha * l_sc[...] + jnp.sum(p, axis=-1, keepdims=True)
    # Deferred normalisation: accumulate the *unnormalised* PV product.
    acc_sc[...] = alpha * acc_sc[...] + jnp.dot(
        p.astype(g_ref.dtype), g_ref[...], preferred_element_type=jnp.float32)
    m_sc[...] = m_new

    @pl.when(ki == pl.num_programs(2) - 1)
    def _():
        # Exact reciprocal on the (tq, 1) denominator, then normalise acc.
        y = acc_sc[...] * (1.0 / l_sc[...])                        # (tq, Ep)
        # BN-folded projection straight to channels-first (Cp, tq) = W' y^T.
        z = lax.dot_general(w_ref[...], y.astype(w_ref.dtype),
                            (((1,), (1,)), ((), ())),
                            preferred_element_type=jnp.float32)    # (Cp, tq)
        o_ref[...] = z + b_ref[...] + x_ref[...]


# ----------------------------------------------------------------------------
# Wrapper
# ----------------------------------------------------------------------------
def non_local_forward(x_ncdhw, params, *, eps=1e-5,
                      compute_dtype=jnp.bfloat16, vmem_limit_bytes=None):
    """x_ncdhw: (B, C, T, H, W) float32, PyTorch NCDHW convention."""
    B, C, T, H, W = x_ncdhw.shape
    N = T * H * W
    E = params["wt"].shape[1]
    f32 = jnp.float32

    Cp = _round_up(C, 8)                   # sublane-dense channels (not 128!)
    Ep = max(128, _round_up(E, 128))       # lane-dense / MXU-filling embed dim
    Np, tq, tk = _choose_tiles(N)

    # ---- one-time parameter folding (exact; parameters only) --------------
    scale = E ** -0.5
    bn_s = params["gamma"] * lax.rsqrt(params["var"] + eps)            # (1, C)
    w_out_t = (params["ww"] * bn_s).T                                  # (C, E)
    b_out = ((params["bw"] - params["mean"]) * bn_s + params["beta"]).T  # (C,1)

    def pad2(a, r, c):
        return jnp.pad(a, ((0, r - a.shape[0]), (0, c - a.shape[1])))

    w_qkv = jnp.concatenate([pad2(params["wt"] * scale, Cp, Ep),
                             pad2(params["wp"], Cp, Ep),
                             pad2(params["wg"], Cp, Ep)], axis=1)      # (Cp,3Ep)
    b_qkv = jnp.concatenate([pad2(params["bt"] * scale, 1, Ep),
                             pad2(params["bp"], 1, Ep),
                             pad2(params["bg"], 1, Ep)], axis=1)       # (1, 3Ep)
    w_qkv = w_qkv.astype(compute_dtype)
    b_qkv = b_qkv.astype(f32)
    w_out_t = pad2(w_out_t, Cp, Ep).astype(compute_dtype)              # (Cp, Ep)
    b_out = pad2(b_out, Cp, 1).astype(f32)                             # (Cp, 1)

    # ---- activations: channels-first (B, C, N) view, no transpose ---------
    x = x_ncdhw.reshape(B, C, N).astype(f32)
    if Cp != C or Np != N:
        x = jnp.pad(x, ((0, 0), (0, Cp - C), (0, Np - N)))

    # ---- scoped-VMEM request computed from the actual block sizes ---------
    csz = jnp.dtype(compute_dtype).itemsize
    k1_est = (2 * (Cp * tq * 4 + Cp * 3 * Ep * csz + 3 * Ep * 4
                   + 3 * tq * Ep * csz) + tq * 3 * Ep * 4)
    k2_est = (2 * (tq * Ep * csz + 2 * tk * Ep * csz + 2 * Cp * tq * 4
                   + Cp * Ep * csz + Cp * 4)
              + (tq * Ep + 2 * tq) * 4 + 4 * tq * tk * 4)
    if vmem_limit_bytes is None:
        vmem_limit_bytes = int(min(max(2 * max(k1_est, k2_est), 32 * 2 ** 20),
                                   56 * 2 ** 20))

    # ---- kernel 1: fused theta|phi|g embedding (contiguous per-tensor out)
    rep2 = lambda b, i: (0, 0)
    qkv_shape = jax.ShapeDtypeStruct((B, Np, Ep), compute_dtype)
    qkv_spec = pl.BlockSpec((None, tq, Ep), lambda b, i: (b, i, 0))
    theta, phi, g = pl.pallas_call(
        functools.partial(_qkv_kernel, ep=Ep),
        out_shape=(qkv_shape, qkv_shape, qkv_shape),
        grid=(B, Np // tq),
        in_specs=[
            pl.BlockSpec((None, Cp, tq), lambda b, i: (b, 0, i)),   # x tile
            pl.BlockSpec((Cp, 3 * Ep), rep2),                       # w_qkv
            pl.BlockSpec((1, 3 * Ep), rep2),                        # b_qkv
        ],
        out_specs=(qkv_spec, qkv_spec, qkv_spec),
        compiler_params=pltpu.CompilerParams(
            dimension_semantics=("parallel", "parallel"),
            vmem_limit_bytes=vmem_limit_bytes),
    )(x, w_qkv, b_qkv)

    # ---- kernel 2: flash attention + BN-folded projection + residual ------
    rep3 = lambda b, qi, ki: (0, 0)
    out = pl.pallas_call(
        functools.partial(_attn_kernel, n_valid=N, tk=tk,
                          mask_keys=(Np != N)),
        out_shape=jax.ShapeDtypeStruct((B, Cp, Np), f32),
        grid=(B, Np // tq, Np // tk),
        in_specs=[
            pl.BlockSpec((None, tq, Ep), lambda b, qi, ki: (b, qi, 0)),  # theta
            pl.BlockSpec((None, tk, Ep), lambda b, qi, ki: (b, ki, 0)),  # phi
            pl.BlockSpec((None, tk, Ep), lambda b, qi, ki: (b, ki, 0)),  # g
            pl.BlockSpec((None, Cp, tq), lambda b, qi, ki: (b, 0, qi)),  # x res
            pl.BlockSpec((Cp, Ep), rep3),                                # W'
            pl.BlockSpec((Cp, 1), rep3),                                 # b'
        ],
        out_specs=pl.BlockSpec((None, Cp, tq), lambda b, qi, ki: (b, 0, qi)),
        scratch_shapes=[pltpu.VMEM((tq, 1), f32),       # running max m
                        pltpu.VMEM((tq, 1), f32),       # running sum l
                        pltpu.VMEM((tq, Ep), f32)],     # unnormalised acc
        compiler_params=pltpu.CompilerParams(
            dimension_semantics=("parallel", "parallel", "arbitrary"),
            vmem_limit_bytes=vmem_limit_bytes),
    )(theta, phi, g, x, w_out_t, b_out)

    # Drop channel / row padding and restore the 5-D NCDHW view (no transpose).
    return out[:, :C, :N].reshape(B, C, T, H, W)


# ----------------------------------------------------------------------------
# Pure-JAX reference (mirrors the PyTorch forward: gaussian branch, eval BN).
# ----------------------------------------------------------------------------
def non_local_reference(x, params, eps=1e-5):
    B, C, T, H, W = x.shape
    N = T * H * W
    E = params["wt"].shape[1]
    xf = x.reshape(B, C, N)
    theta = jnp.einsum("bcn,ce->ben", xf, params["wt"]) + params["bt"].reshape(1, E, 1)
    phi = jnp.einsum("bcn,ce->ben", xf, params["wp"]) + params["bp"].reshape(1, E, 1)
    g = jnp.einsum("bcn,ce->ben", xf, params["wg"]) + params["bg"].reshape(1, E, 1)
    tp = jnp.einsum("ben,bem->bnm", theta, phi) * (E ** -0.5)
    attn = jax.nn.softmax(tp, axis=-1)
    y = jnp.einsum("bem,bnm->ben", g, attn)          # torch.bmm(g, attn^T)
    wy = jnp.einsum("ben,ec->bcn", y, params["ww"]) + params["bw"].reshape(1, C, 1)
    inv_std = lax.rsqrt(params["var"].reshape(1, C, 1) + eps)
    z = (wy - params["mean"].reshape(1, C, 1)) * inv_std \
        * params["gamma"].reshape(1, C, 1) + params["beta"].reshape(1, C, 1)
    return z.reshape(B, C, T, H, W) + x


if __name__ == "__main__":
    key = jax.random.PRNGKey(0)

    def rnd(k, shape, scale=0.1):
        return scale * jax.random.normal(k, shape, jnp.float32)

    def make_params(k, C, E):
        ks = jax.random.split(k, 12)
        return dict(
            wt=rnd(ks[0], (C, E)), bt=rnd(ks[1], (1, E)),
            wp=rnd(ks[2], (C, E)), bp=rnd(ks[3], (1, E)),
            wg=rnd(ks[4], (C, E)), bg=rnd(ks[5], (1, E)),
            ww=rnd(ks[6], (E, C)), bw=rnd(ks[7], (1, C)),
            gamma=1.0 + rnd(ks[8], (1, C)), beta=rnd(ks[9], (1, C)),
            mean=rnd(ks[10], (1, C)), var=1.0 + jnp.abs(rnd(ks[11], (1, C))),
        )

    kA, kB, kx1, kx2 = jax.random.split(key, 4)

    # Config A: tiny single-tile shapes (embed_dim = in_channels // 2).
    B1, C1, T1, H1, W1 = 2, 16, 2, 4, 4
    p1 = make_params(kA, C1, C1 // 2)
    x1 = jax.random.normal(kx1, (B1, C1, T1, H1, W1), jnp.float32)
    ref1 = non_local_reference(x1, p1)

    z32 = jax.block_until_ready(
        non_local_forward(x1, p1, compute_dtype=jnp.float32))
    assert z32.shape == x1.shape and z32.dtype == jnp.float32
    assert jnp.allclose(z32, ref1, atol=1e-3, rtol=1e-3), \
        float(jnp.max(jnp.abs(z32 - ref1)))

    zbf = jax.block_until_ready(
        non_local_forward(x1, p1, compute_dtype=jnp.bfloat16))
    assert zbf.shape == x1.shape and zbf.dtype == jnp.float32
    assert jnp.allclose(zbf, ref1, atol=2e-2, rtol=2e-2), \
        float(jnp.max(jnp.abs(zbf - ref1)))

    # Config B: N = 288 -> exercises the flash K-loop, N padding and key mask.
    B2, C2, T2, H2, W2 = 1, 8, 2, 12, 12
    p2 = make_params(kB, C2, C2 // 2)
    x2 = jax.random.normal(kx2, (B2, C2, T2, H2, W2), jnp.float32)
    ref2 = non_local_reference(x2, p2)
    z2 = jax.block_until_ready(
        non_local_forward(x2, p2, compute_dtype=jnp.float32))
    assert z2.shape == x2.shape
    assert jnp.allclose(z2, ref2, atol=1e-3, rtol=1e-3), \
        float(jnp.max(jnp.abs(z2 - ref2)))

    print("KERNEL_OK")
</pallas_src>

<mosaic_0001>
module attributes {stable_mosaic.version = 11 : i64} {
  func.func @_qkv_kernel(%arg0: i32, %arg1: i32, %arg2: memref<1x16x32xf32, #tpu.memory_space<vmem>>, %arg3: memref<16x384xf32, #tpu.memory_space<vmem>>, %arg4: memref<1x384xf32, #tpu.memory_space<vmem>>, %arg5: memref<1x32x128xf32, #tpu.memory_space<vmem>>, %arg6: memref<1x32x128xf32, #tpu.memory_space<vmem>>, %arg7: memref<1x32x128xf32, #tpu.memory_space<vmem>>) attributes {dimension_semantics = [#tpu.dimension_semantics<parallel>, #tpu.dimension_semantics<parallel>], iteration_bounds = array<i64: 2, 1>, scalar_prefetch = 0 : i64, scratch_operands = 0 : i64, tpu.core_type = #tpu.core_type<tc>, window_params = [{transform_indices = @transform_0, window_bounds = array<i64: 1, 16, 32>}, {pipeline_mode = #tpu.pipeline_mode<synchronous>, transform_indices = @transform_1, window_bounds = array<i64: 16, 384>}, {pipeline_mode = #tpu.pipeline_mode<synchronous>, transform_indices = @transform_2, window_bounds = array<i64: 1, 384>}, {transform_indices = @transform_3, window_bounds = array<i64: 1, 32, 128>}, {transform_indices = @transform_4, window_bounds = array<i64: 1, 32, 128>}, {transform_indices = @transform_5, window_bounds = array<i64: 1, 32, 128>}]} {
    %c0 = arith.constant 0 : index
    %c0_0 = arith.constant 0 : index
    %c0_1 = arith.constant 0 : index
    %0 = vector.load %arg2[%c0, %c0_0, %c0_1] : memref<1x16x32xf32, #tpu.memory_space<vmem>>, vector<1x16x32xf32>
    %1 = vector.shape_cast %0 : vector<1x16x32xf32> to vector<16x32xf32>
    %c0_2 = arith.constant 0 : index
    %c0_3 = arith.constant 0 : index
    %2 = vector.load %arg3[%c0_2, %c0_3] : memref<16x384xf32, #tpu.memory_space<vmem>>, vector<16x384xf32>
    %cst = arith.constant dense<0.000000e+00> : vector<32x384xf32>
    %3 = tpu.matmul %1, %2, %cst {dimension_numbers = #tpu.dot_dimension_numbers<[0], [0], [1], [1], [0, 1, 1, 1], [], []>} : vector<16x32xf32>, vector<16x384xf32>, vector<32x384xf32> -> vector<32x384xf32>
    %c0_4 = arith.constant 0 : index
    %c0_5 = arith.constant 0 : index
    %4 = vector.load %arg4[%c0_4, %c0_5] : memref<1x384xf32, #tpu.memory_space<vmem>>, vector<1x384xf32>
    %5 = vector.broadcast %4 : vector<1x384xf32> to vector<32x384xf32>
    %6 = arith.addf %3, %5 : vector<32x384xf32>
    %7 = vector.extract_strided_slice %6 {offsets = [0, 0], sizes = [32, 128], strides = [1, 1]} : vector<32x384xf32> to vector<32x128xf32>
    %c0_6 = arith.constant 0 : index
    %c0_7 = arith.constant 0 : index
    %c0_8 = arith.constant 0 : index
    %8 = vector.load %arg5[%c0_6, %c0_7, %c0_8] : memref<1x32x128xf32, #tpu.memory_space<vmem>>, vector<1x32x128xf32>
    %9 = vector.shape_cast %8 : vector<1x32x128xf32> to vector<32x128xf32>
    %10 = vector.shape_cast %7 : vector<32x128xf32> to vector<1x32x128xf32>
    tpu.vector_store %arg5[%c0_6, %c0_7, %c0_8], %10 {strides = array<i32>} : memref<1x32x128xf32, #tpu.memory_space<vmem>>, vector<1x32x128xf32>,
    %11 = vector.extract_strided_slice %6 {offsets = [0, 128], sizes = [32, 128], strides = [1, 1]} : vector<32x384xf32> to vector<32x128xf32>
    %c0_9 = arith.constant 0 : index
    %c0_10 = arith.constant 0 : index
    %c0_11 = arith.constant 0 : index
    %12 = vector.load %arg6[%c0_9, %c0_10, %c0_11] : memref<1x32x128xf32, #tpu.memory_space<vmem>>, vector<1x32x128xf32>
    %13 = vector.shape_cast %12 : vector<1x32x128xf32> to vector<32x128xf32>
    %14 = vector.shape_cast %11 : vector<32x128xf32> to vector<1x32x128xf32>
    tpu.vector_store %arg6[%c0_9, %c0_10, %c0_11], %14 {strides = array<i32>} : memref<1x32x128xf32, #tpu.memory_space<vmem>>, vector<1x32x128xf32>,
    %15 = vector.extract_strided_slice %6 {offsets = [0, 256], sizes = [32, 128], strides = [1, 1]} : vector<32x384xf32> to vector<32x128xf32>
    %c0_12 = arith.constant 0 : index
    %c0_13 = arith.constant 0 : index
    %c0_14 = arith.constant 0 : index
    %16 = vector.load %arg7[%c0_12, %c0_13, %c0_14] : memref<1x32x128xf32, #tpu.memory_space<vmem>>, vector<1x32x128xf32>
    %17 = vector.shape_cast %16 : vector<1x32x128xf32> to vector<32x128xf32>
    %18 = vector.shape_cast %15 : vector<32x128xf32> to vector<1x32x128xf32>
    tpu.vector_store %arg7[%c0_12, %c0_13, %c0_14], %18 {strides = array<i32>} : memref<1x32x128xf32, #tpu.memory_space<vmem>>, vector<1x32x128xf32>,
    return
  }
  func.func @transform_0(%arg0: i32, %arg1: i32) -> (i32, i32, i32) {
    %c0_i32 = arith.constant 0 : i32
    %c0_i32_0 = arith.constant 0 : i32
    return %arg0, %c0_i32, %arg1 : i32, i32, i32
  }
  func.func @transform_1(%arg0: i32, %arg1: i32) -> (i32, i32) {
    %c0_i32 = arith.constant 0 : i32
    %c0_i32_0 = arith.constant 0 : i32
    %c0_i32_1 = arith.constant 0 : i32
    return %c0_i32, %c0_i32_0 : i32, i32
  }
  func.func @transform_2(%arg0: i32, %arg1: i32) -> (i32, i32) {
    %c0_i32 = arith.constant 0 : i32
    %c0_i32_0 = arith.constant 0 : i32
    %c0_i32_1 = arith.constant 0 : i32
    return %c0_i32, %c0_i32_0 : i32, i32
  }
  func.func @transform_3(%arg0: i32, %arg1: i32) -> (i32, i32, i32) {
    %c0_i32 = arith.constant 0 : i32
    %c0_i32_0 = arith.constant 0 : i32
    return %arg0, %arg1, %c0_i32 : i32, i32, i32
  }
  func.func @transform_4(%arg0: i32, %arg1: i32) -> (i32, i32, i32) {
    %c0_i32 = arith.constant 0 : i32
    %c0_i32_0 = arith.constant 0 : i32
    return %arg0, %arg1, %c0_i32 : i32, i32, i32
  }
  func.func @transform_5(%arg0: i32, %arg1: i32) -> (i32, i32, i32) {
    %c0_i32 = arith.constant 0 : i32
    %c0_i32_0 = arith.constant 0 : i32
    return %arg0, %arg1, %c0_i32 : i32, i32, i32
  }
}

</mosaic_0001>

<bundles_post_ra>
// kernel: tpu_custom_call.1
= control target key start
LH: loop header
LB: loop body
LE: loop exit
PB: predicated region body
PF: predicated region fallthrough
CT: control target
= control target key end

     0   :  { %s1500_s0 = inlined_call_operand.hbm [shape: f32[2,16,32], index: 0, kind: input, shape index: {}]   ;;  %s1501_s1 = inlined_call_operand.hbm [shape: f32[16,384], index: 1, kind: input, shape index: {}]   ;;  %s1502_s2 = inlined_call_operand.vmem [shape: f32[1,384], index: 2, kind: input, shape index: {}]   ;;  %s1503_s3 = inlined_call_operand.hbm [shape: f32[2,32,128], index: 3, kind: output, shape index: {0}]   ;;  %s1504_s4 = inlined_call_operand.hbm [shape: f32[2,32,128], index: 4, kind: output, shape index: {1}]   ;;  %s1505_s5 = inlined_call_operand.hbm [shape: f32[2,32,128], index: 5, kind: output, shape index: {2}]  }
   0x1   :  { %1510 = sst [smem:[#allocation15_spill]] %s1500_s0 }
   0x2   :  { %11 = vsyncpa [#allocation3], 0 }
   0x3   :  { %13 = vsyncpa [#allocation3 + $0x1], 0 }
   0x4   :  { %14 = vsyncpa [#allocation6], 0 }
   0x5   :  { %15 = vsyncpa [#allocation4], 0 }
   0x6   :  { %17 = vsyncpa [#allocation4 + $0x1], 0 }
   0x7   :  { %18 = vsyncpa [#allocation9], 0 }
   0x8   :  { %20 = vsyncpa [#allocation9 + $0x1], 0  ;;  %s1182_s18 = smov 0   ;;  %s1184_s19 = smov 0  }
   0x9   :  { %s1186_s20 = smov 0   ;;  %s1188_s21 = smov 0  }
   0xa   :  { %s1190_s22 = smov 0   ;;  %s1192_s23 = smov 0  }
   0xb LB: > { %s1213_s24 = sadd.s32 4294967295, %s1138_s23   ;;  %s1509_s25 = sadd.s32 4294967294, %s1138_s23   ;;  %s1138_s23 = sphi %s1192_s23, %s26_s23   ;;  %s1134_s22 = sphi %s1190_s22, %s1532_s22   ;;  %s1130_s21 = sphi %s1188_s21, %s1531_s21   ;;  %s1126_s20 = sphi %s1186_s20, %s1530_s20   ;;  %s1122_s19 = sphi %s1184_s19, %s1529_s19   ;;  %s1118_s18 = sphi %s1182_s18, %s1528_s18  }
   0xc   : > { %p60_p0 = scmp.ne.s32.totalorder %s1122_s19, %s1118_s18  ;;  %p1506_p1 = scmp.eq.s32.totalorder %s1213_s24, 0 }
   0xd   : > { %p134_p3 = scmp.eq.s32.totalorder %s1509_s25, 1  ;;  %p783_p5 = scmp.ge.s32.totalorder %s1138_s23, 1 }
   0xe   : > { %p1224_p4 = por %p1506_p1, %p60_p0  ;;  %p197_p7 = scmp.lt.s32.totalorder %s1138_s23, 3 }
   0xf   : > { %p1229_p6 = por %p134_p3, %p60_p0  ;;  %s1140_s29 = smov [#allocation5]  }
  0x10   : > { %s1511_s26 = scalar_select %p1224_p4, 1, 0 }
  0x11   : > { %s1512_s27 = scalar_select %p1229_p6, 1, 0 }
  0x12   : > { %p1234_p8 = pnand %p783_p5, %p197_p7  ;;  %s209_s30 = sshll.u32 %s1140_s29, 4  ;;  %s210_s30 = int_to_ptr.vmem [resolvable:$true] %s209_s30 }
  0x13   : > { %s38_s7 = sadd.s32 1, %s1134_s22  ;;  %s934_s10 = scalar_lea.hbm %s1501_s1, 768 }
  0x14   : > { %s1513_s28 = scalar_select %p1234_p8, 1, 0 }
  0x15   : > { %p856_p9 = pneg %p1234_p8  ;;  %p935_p12 = scmp.ne.s32.totalorder %s1501_s1, %s934_s10 }
  0x16   : > { %p941_p5 = scmp.lt.u32.totalorder %s934_s10, %s1501_s1 }
  0x17   : > { %p1243_p11 = pnand %p856_p9, %p1506_p1 }
  0x19   : > { %p936_p13 = pneg %p1243_p11 }
  0x1b   : > { %p937_p0 = pnand %p936_p13, %p935_p12 }
  0x1d   : > { %p938_p3 = pneg %p937_p0 }
  0x1f   : > { %p943_p7 = pnand %p941_p5, %p938_p3 }
  0x21   : > { %946 = shalt.err (!%p943_p7)
}
  0x22   : > { %s947_s15 = scalar_lea.vmem %s210_s30, 768  ;;  %p955_p2 = scmp.lt.s32.totalorder %s210_s30, %s210_s30 }
  0x23   : > { %p948_p9 = scmp.ne.s32.totalorder %s210_s30, %s947_s15  ;;  %p956_p6 = scmp.lt.s32.totalorder %s947_s15, %s947_s15 }
  0x25   : > { %p950_p10 = pnand %p948_p9, %p936_p13  ;;  %p957_p4 = por %p956_p6, %p955_p2 }
  0x27   : > { %p951_p1 = pneg %p950_p10 }
  0x29   : > { %p958_p8 = pnand %p957_p4, %p951_p1 }
  0x2b   : > { %961 = shalt.err (!%p958_p8)
}
  0x2c   : > { %s1141_s16 = smov 384   ;;  %s1142_s17 = smov 24  }
  0x2d   : > { %859 = dma.hbm_to_vmem [thread:$0]  (!%p1243_p11), %s1501_s1, 768, %s210_s30, [#allocation6], %s1141_s16, %s1141_s16, %s1142_s17  }
  0x2e   : > { %p40_p1 = scmp.ge.s32.totalorder %s38_s7, 2  ;;  %s47_s9 = sadd.s32 1, %s1126_s20 }
  0x2f   : > { %p54_p2 = scmp.ne.s32.totalorder %s1126_s20, %s1122_s19  ;;  %p55_p4 = scmp.eq.s32.totalorder %s1138_s23, 0 }
  0x30   : > { %s1534_s7 = smov (%p40_p1, %s38_s7), 0  ;;  %p1516_p8 = scmp.eq.s32.totalorder %s1213_s24, 1 }
  0x31   : > { %p1270_p6 = por %p55_p4, %p54_p2  ;;  %s42_s6 = ssub.s32 %s1134_s22, %s1534_s7 }
  0x32   : > { %p1276_p10 = por %p1516_p8, %p54_p2  ;;  %p875_p12 = scmp.lt.s32.totalorder %s1138_s23, 2 }
  0x33   : > { %p45_p11 = scmp.eq.s32.totalorder %s42_s6, 0  ;;  %s226_s30 = sand.u32 1, %s1126_s20  }
  0x34   : > { %s786_s12 = sshll.u32 %s226_s30, 4  ;;  %s814_s14 = sshll.u32 %s1134_s22, 8 }
  0x35   : > { %s1285_s13 = scalar_select %p45_p11, %s1126_s20, %s47_s9  }
  0x36   : > { %s1518_s0 = sld [smem:[#allocation15_spill]]  ;;  %s230_s29 = scalar_lea.vmem [#allocation2], %s786_s12 }
  0x37   : > { %s238_s8 = sshll.u32 %s230_s29, 4  ;;  %p1297_p13 = pnand %p875_p12, %p1270_p6  ;;  %s1293_s8 = int_to_ptr.vmem [resolvable:$true] %s238_s8 }
  0x38   : > { %s1301_s9 = scalar_lea.sflag [#allocation3], %s226_s30 }
  0x39   : > { %p964_p3 = pneg %p1297_p13 }
  0x3c   : > { %s1291_s17 = scalar_lea.hbm %s1518_s0, %s814_s14  ;;  %s967_s10 = scalar_lea.hbm %s1518_s0, 512 }
  0x3d   : > { %s962_s15 = scalar_lea.hbm %s1291_s17, 256  ;;  %p968_p9 = scmp.lt.u32.totalorder %s1291_s17, %s1518_s0 }
  0x3e   : > { %p963_p0 = scmp.ne.s32.totalorder %s1291_s17, %s962_s15  ;;  %p969_p1 = scmp.lt.u32.totalorder %s967_s10, %s962_s15 }
  0x3f   : > { %p971_p4 = scmp.lt.u32.totalorder %s962_s15, %s1291_s17 }
  0x40   : > { %p965_p5 = pnand %p964_p3, %p963_p0  ;;  %p970_p2 = por %p969_p1, %p968_p9 }
  0x42   : > { %p966_p7 = pneg %p965_p5  ;;  %p972_p6 = por %p971_p4, %p970_p2 }
  0x44   : > { %p973_p8 = pnand %p972_p6, %p966_p7 }
  0x46   : > { %976 = shalt.err (!%p973_p8)
}
  0x47   : > { %s977_s30 = scalar_lea.vmem %s1293_s8, 256  ;;  %s1143_s12 = smov [#allocation2]  }
  0x48   : > { %p978_p12 = scmp.ne.s32.totalorder %s1293_s8, %s977_s30  ;;  %s982_s14 = sshll.u32 %s1143_s12, 4  ;;  %s983_s14 = int_to_ptr.vmem [resolvable:$false] %s982_s14 }
  0x49   : > { %s984_s16 = scalar_lea.vmem %s983_s14, 512  ;;  %p985_p5 = scmp.lt.s32.totalorder %s1293_s8, %s983_s14 }
  0x4a   : > { %p980_p11 = pnand %p978_p12, %p964_p3  ;;  %p986_p9 = scmp.lt.s32.totalorder %s984_s16, %s977_s30 }
  0x4c   : > { %p981_p0 = pneg %p980_p11  ;;  %p987_p1 = por %p986_p9, %p985_p5 }
  0x4e   : > { %p988_p2 = pnand %p987_p1, %p981_p0 }
  0x50   : > { %991 = shalt.err (!%p988_p2)
}
  0x51   : > { %s1144_s15 = smov 128   ;;  %s1145_s10 = smov 8  }
  0x52   : > { %863 = dma.hbm_to_vmem [thread:$0]  (!%p1297_p13), %s1291_s17, 256, %s1293_s8, %s1301_s9, %s1144_s15, %s1144_s15, %s1145_s10  }
  0x53   : > { %p1520_p3 = scmp.ne.s32.totalorder %s1513_s28, 0 }
  0x54   : > { %s1332_s29 = sand.u32 (!%p1520_p3), 1, %s1122_s19   ;;  %p1521_p7 = scmp.ne.s32.totalorder (!%p1520_p3), %s1511_s26, 0 }
  0x55   : > { %250 = sbr.rel (%p1520_p3) target bundleno = 517 (0x205), region = 32  ;;  %s790_s30 = sshll.u32 (!%p1520_p3), %s1332_s29, 4 }
  0x56   : > { %s253_s12 = scalar_lea.sflag (!%p1520_p3), [#allocation3], %s1332_s29  ;;  %s256_s14 = scalar_lea.vmem (!%p1520_p3), [#allocation2], %s790_s30 }
  0x5c   : > { %1101 = dma.done.wait (%p1521_p7), %s253_s12, 256  }
  0x5d   : > { %1103 = vsyncadd (%p1521_p7), %s253_s12, 4294967040  ;;  %p1522_p4 = scmp.eq.s32.totalorder %s1213_s24, 0 }
  0x5f   : > { %1105 = dma.done.wait (%p1522_p4), [#allocation6], 768   ;;  %p1523_p13 = pmov %p1522_p4 }
  0x60   : > { %v1146_v0 = vmov 0.0   ;;  %v300_v1 = vld [vmem:[%s256_s14] sm:$0xff]  ;;  %v303_v2 = vld [vmem:[#allocation5 + $0x8] sm:$0xff]  ;;  %v305_v5 = vld [vmem:[#allocation5 + $0x18] sm:$0xff]  ;;  %vm357_vm0 = vcmask 130048   ;;  %v310_v16 = vlaneseq  ;;  %s1348_s17 = sshll.u32 %s1332_s29, 5 }
  0x61   : > { %1107 = vsyncadd (%p1523_p13), [#allocation6], 4294966528  ;;  %434 = vmatprep.mubr.f32.mxu0 %v1146_v0  ;;  %452 = vmatprep.mubr.f32.mxu1 %v1146_v0  ;;  %v306_v3 = vld [vmem:[#allocation5 + $0x20] sm:$0xff]  ;;  %v301_v6 = vld [vmem:[%s256_s14 + $0x8] sm:$0xff]  ;;  %s1351_s8 = scalar_lea.vmem [#allocation7], %s1348_s17  ;;  %s289_s6 = scalar_lea.vmem [#allocation8], %s1348_s17 }
  0x62   : > { %325 = vxpose.xlu0.b32.start [1/2] (short) (narrow) %v300_v1, 32  ;;  %v302_v4 = vld [vmem:[#allocation5] sm:$0xff]  ;;  %v834_v7 = vpack.c.bf16 %v306_v3, %v303_v2  ;;  %v304_v9 = vld [vmem:[#allocation5 + $0x10] sm:$0xff]  ;;  %v307_v10 = vld [vmem:[#allocation5 + $0x28] sm:$0xff]  ;;  %v311_v17 = vshrl.u32 %v310_v16, 7  ;;  %s582_s9 = sshll.u32 %s1351_s8, 4  ;;  %s1357_s9 = int_to_ptr.vmem [resolvable:$true] %s582_s9 }
  0x63   : > { %v836_v8 = vpack.c.bf16 %v305_v5, %v302_v4  ;;  %v838_v11 = vpack.c.bf16 %v307_v10, %v304_v9  ;;  %v308_v19 = vld [vmem:[%s1502_s2] sm:$0x7]  ;;  %s600_s16 = sshll.u32 %s289_s6, 4  ;;  %s1360_s15 = sshll.u32 %s1130_s21, 9  ;;  %s1362_s16 = int_to_ptr.vmem [resolvable:$true] %s600_s16 }
  0x64   : > { %835 = vmatprep.subr.bf16.mxu0 %v834_v7  ;;  %842 = vmatprep.subr.bf16.mxu1 %v834_v7  ;;  %v312_v18 = vsub.s32 0, %v311_v17  ;;  %v316_v20 = vsub.s32 1, %v311_v17  ;;  %v320_v34 = vsub.s32 2, %v311_v17  ;;  %s1372_s21 = scalar_lea.hbm %s1503_s3, %s1360_s15  ;;  %s1378_s28 = scalar_lea.hbm %s1504_s4, %s1360_s15 }
  0x65   : > { %837 = vmatpush1.bf16.msra.mxu0 %v836_v8  ;;  %843 = vmatpush1.bf16.msra.mxu1 %v836_v8  ;;  %s557_s25 = scalar_lea.sflag [#allocation4], %s1332_s29  ;;  %s992_s10 = scalar_lea.vmem %s1357_s9, 512 }
  0x66   : > { %326 = vxpose.xlu0.b32.end [2/2] (short) (narrow) %v301_v6, 32  ;;  %839 = vmatprep.subr.bf16.mxu1 %v838_v11  ;;  %v313_v21 = vrot.slane %v308_v19, %v312_v18  ;;  %v317_v22 = vrot.slane %v308_v19, %v316_v20  ;;  %v1366_v39 = vrot.slane %v308_v19, %v320_v34  ;;  %p993_p6 = scmp.ne.s32.totalorder %s1357_s9, %s992_s10  ;;  %s1147_s0 = smov [#allocation7]  }
  0x67   : > { %s996_s30 = sshll.u32 %s1147_s0, 4  ;;  %s997_s30 = int_to_ptr.vmem [resolvable:$false] %s996_s30 }
  0x68   : > { %p994_p8 = pnand %p993_p6, %p1276_p10  ;;  %s998_s12 = scalar_lea.vmem %s997_s30, 1024 }
  0x69   : > { %p999_p11 = scmp.lt.s32.totalorder %s1357_s9, %s997_s30  ;;  %p1000_p0 = scmp.lt.s32.totalorder %s998_s12, %s992_s10 }
  0x6a   : > { %p995_p12 = pneg %p994_p8 }
  0x6b   : > { %p1001_p5 = por %p1000_p0, %p999_p11 }
  0x6d   : > { %p1002_p9 = pnand %p1001_p5, %p995_p12 }
  0xe2   : > { %v341_v12 = vpop.trf.xlu0 }
  0xe3   : > { %795 = vmatmul.mubr.msk.f32.vlgmr.msra.gmra.mrb[0].mxu0 %vm357_vm0, %v341_v12 }
  0xe4   : > { %440 = vmatprep.mubr.f32.mxu0 %v1146_v0 }
  0xe6   : > { %v342_v13 = vpop.trf.xlu0 }
  0xe7   : > { %796 = vmatmul.mubr.msk.f32.gmra.mrb[2].mxu0 %vm357_vm0, %v342_v13 }
  0xe8   : > { %446 = vmatprep.mubr.f32.mxu0 %v1146_v0 }
  0xea   : > { %v343_v14 = vpop.trf.xlu0 }
  0xeb   : > { %797 = vmatmul.mubr.msk.f32.gmra.mrb[4].mxu0 %vm357_vm0, %v343_v14 }
  0xee   : > { %v344_v15 = vpop.trf.xlu0 }
  0xef   : > { %798 = vmatmul.mubr.msk.f32.vlgmr.msra.gmra.mrb[0].mxu1 %vm357_vm0, %v344_v15 }
  0xf0   : > { %841 = vmatpush3.bf16.msra.mxu1 %v838_v11  ;;  %828 = vmatprep.mubr.msk.f32.mxu1 %vm357_vm0, %v341_v12 }
  0xf3   : > { %829 = vmatmul.mubr.msk.f32.vlgmr.msra.gmra.mrb[2].mxu1 %vm357_vm0, %v342_v13 }
  0xf4   : > { %831 = vmatprep.mubr.msk.f32.mxu1 %vm357_vm0, %v343_v14 }
  0xf7   : > { %832 = vmatmul.mubr.msk.f32.gmra.mrb[4].mxu1 %vm357_vm0, %v344_v15 }
 0x1b6   : > { %v436_v23 = vpop.f32.mrb[0].mxu0 }
 0x1b7   : > { %v437_v24 = vadd.f32 %v436_v23, %v313_v21  ;;  %v438_v25 = vpop.f32.mrb[1].mxu0 }
 0x1b8   : > { %v439_v26 = vadd.f32 %v438_v25, %v317_v22 }
 0x1b9   : > { %544 = vst [vmem:[%s1351_s8] sm:$0xff] %v437_v24 }
 0x1ba   : > { %548 = vst [vmem:[%s289_s6] sm:$0xff] %v439_v26  ;;  %v442_v27 = vpop.f32.mrb[2].mxu0 }
 0x1bb   : > { %v443_v28 = vadd.f32 %v442_v27, %v313_v21  ;;  %v444_v29 = vpop.f32.mrb[3].mxu0 }
 0x1bc   : > { %v445_v30 = vadd.f32 %v444_v29, %v317_v22 }
 0x1bd   : > { %545 = vst [vmem:[%s1351_s8 + $0x8] sm:$0xff] %v443_v28 }
 0x1be   : > { %549 = vst [vmem:[%s289_s6 + $0x8] sm:$0xff] %v445_v30  ;;  %v448_v31 = vpop.f32.mrb[4].mxu0 }
 0x1bf   : > { %v449_v32 = vadd.f32 %v448_v31, %v313_v21  ;;  %v450_v33 = vpop.f32.mrb[5].mxu0 }
 0x1c0   : > { %v451_v35 = vadd.f32 %v450_v33, %v317_v22 }
 0x1c1   : > { %546 = vst [vmem:[%s1351_s8 + $0x10] sm:$0xff] %v449_v32 }
 0x1c2   : > { %550 = vst [vmem:[%s289_s6 + $0x10] sm:$0xff] %v451_v35  ;;  %v454_v36 = vpop.f32.mrb[0].mxu1 }
 0x1c3   : > { %v455_v37 = vadd.f32 %v454_v36, %v313_v21  ;;  %v456_v38 = vpop.f32.mrb[1].mxu1 }
 0x1c4   : > { %v457_v40 = vadd.f32 %v456_v38, %v317_v22 }
 0x1c5   : > { %547 = vst [vmem:[%s1351_s8 + $0x18] sm:$0xff] %v455_v37 }
 0x1c6   : > { %551 = vst [vmem:[%s289_s6 + $0x18] sm:$0xff] %v457_v40  ;;  %v830_v41 = vpop.f32.mrb[2].mxu1 }
 0x1c7   : > { %1005 = shalt.err (!%p1002_p9)
}
 0x1c8   : > { %s1006_s8 = scalar_lea.hbm %s1372_s21, 512  ;;  %s1010_s0 = scalar_lea.hbm %s1503_s3, 1024 }
 0x1c9   : > { %p1007_p1 = scmp.ne.s32.totalorder %s1372_s21, %s1006_s8  ;;  %p1011_p7 = scmp.lt.u32.totalorder %s1372_s21, %s1503_s3 }
 0x1ca   : > { %p1012_p4 = scmp.lt.u32.totalorder %s1010_s0, %s1006_s8  ;;  %p1014_p6 = scmp.lt.u32.totalorder %s1006_s8, %s1372_s21 }
 0x1cb   : > { %p1008_p2 = pnand %p1007_p1, %p1276_p10 }
 0x1cc   : > { %p1013_p13 = por %p1012_p4, %p1011_p7 }
 0x1cd   : > { %p1009_p3 = pneg %p1008_p2 }
 0x1ce   : > { %p1015_p8 = por %p1014_p6, %p1013_p13 }
 0x1d0   : > { %p1016_p12 = pnand %p1015_p8, %p1009_p3 }
 0x1d2   : > { %1019 = shalt.err (!%p1016_p12)
}
 0x1d3   : > { %s1148_s10 = smov 128   ;;  %s1149_s12 = smov 8   ;;  %v531_v42 = vadd.f32 %v830_v41, %v1366_v39  ;;  %v525_v43 = vpop.f32.mrb[3].mxu1 }
 0x1d4   : > { %850 = dma.vmem_to_hbm [thread:$0]  (%p1276_p10), %s1357_s9, 512, %s1372_s21, %s557_s25, %s1148_s10, %s1148_s10, %s1149_s12  }
 0x1d5   : > { %s1524_s8 = sand.u32 1, %s1213_s24   ;;  %s1020_s14 = scalar_lea.vmem %s1362_s16, 512 }
 0x1d6   : > { %s1411_s6 = scalar_lea.sflag [#allocation9], %s1524_s8  ;;  %p1021_p11 = scmp.ne.s32.totalorder %s1362_s16, %s1020_s14 }
 0x1d7   : > { %s1150_s0 = smov [#allocation8]  }
 0x1d8   : > { %p1022_p0 = pnand %p1021_p11, %p1276_p10  ;;  %s1024_s26 = sshll.u32 %s1150_s0, 4  ;;  %s1025_s26 = int_to_ptr.vmem [resolvable:$false] %s1024_s26 }
 0x1d9   : > { %s1026_s30 = scalar_lea.vmem %s1025_s26, 1024  ;;  %p1027_p9 = scmp.lt.s32.totalorder %s1362_s16, %s1025_s26 }
 0x1da   : > { %p1023_p5 = pneg %p1022_p0  ;;  %p1028_p1 = scmp.lt.s32.totalorder %s1026_s30, %s1020_s14 }
 0x1dc   : > { %p1029_p2 = por %p1028_p1, %p1027_p9 }
 0x1de   : > { %p1030_p3 = pnand %p1029_p2, %p1023_p5 }
 0x1e0   : > { %1033 = shalt.err (!%p1030_p3)
}
 0x1e1   : > { %s1034_s24 = scalar_lea.hbm %s1378_s28, 512  ;;  %s1038_s9 = scalar_lea.hbm %s1504_s4, 1024 }
 0x1e2   : > { %p1035_p7 = scmp.ne.s32.totalorder %s1378_s28, %s1034_s24  ;;  %p1039_p6 = scmp.lt.u32.totalorder %s1378_s28, %s1504_s4 }
 0x1e3   : > { %p1040_p8 = scmp.lt.u32.totalorder %s1038_s9, %s1034_s24  ;;  %p1042_p11 = scmp.lt.u32.totalorder %s1034_s24, %s1378_s28 }
 0x1e4   : > { %p1036_p4 = pnand %p1035_p7, %p1276_p10 }
 0x1e5   : > { %p1041_p12 = por %p1040_p8, %p1039_p6 }
 0x1e6   : > { %p1037_p13 = pneg %p1036_p4 }
 0x1e7   : > { %p1043_p0 = por %p1042_p11, %p1041_p12 }
 0x1e9   : > { %p1044_p5 = pnand %p1043_p0, %p1037_p13 }
 0x1eb   : > { %1047 = shalt.err (!%p1044_p5)
}
 0x1ec   : > { %851 = dma.vmem_to_hbm [thread:$0]  (%p1276_p10), %s1362_s16, 512, %s1378_s28, %s1411_s6, %s1148_s10, %s1148_s10, %s1149_s12   ;;  %v526_v44 = vadd.f32 %v525_v43, %v1366_v39  ;;  %v833_v45 = vpop.f32.mrb[4].mxu1 }
 0x1ed   : > { %s296_s14 = scalar_lea.vmem [#allocation10], %s1348_s17  ;;  %v541_v46 = vadd.f32 %v833_v45, %v1366_v39  ;;  %v535_v47 = vpop.f32.mrb[5].mxu1  ;;  %s1448_s28 = scalar_lea.hbm %s1505_s5, %s1360_s15 }
 0x1ee   : > { %553 = vst [vmem:[%s296_s14 + $0x8] sm:$0xff] %v531_v42  ;;  %s618_s0 = sshll.u32 %s296_s14, 4  ;;  %552 = vst [vmem:[%s296_s14] sm:$0xff] %v526_v44  ;;  %v536_v48 = vadd.f32 %v535_v47, %v1366_v39  ;;  %s1151_s30 = smov [#allocation10]   ;;  %s1441_s0 = int_to_ptr.vmem [resolvable:$true] %s618_s0 }
 0x1ef   : > { %555 = vst [vmem:[%s296_s14 + $0x18] sm:$0xff] %v541_v46  ;;  %s1048_s17 = scalar_lea.vmem %s1441_s0, 512  ;;  %s1052_s24 = sshll.u32 %s1151_s30, 4  ;;  %s1053_s24 = int_to_ptr.vmem [resolvable:$false] %s1052_s24 }
 0x1f0   : > { %554 = vst [vmem:[%s296_s14 + $0x10] sm:$0xff] %v536_v48  ;;  %p1049_p9 = scmp.ne.s32.totalorder %s1441_s0, %s1048_s17  ;;  %s1054_s25 = scalar_lea.vmem %s1053_s24, 1024 }
 0x1f1   : > { %p1055_p3 = scmp.lt.s32.totalorder %s1441_s0, %s1053_s24  ;;  %p1056_p7 = scmp.lt.s32.totalorder %s1054_s25, %s1048_s17 }
 0x1f2   : > { %p1050_p1 = pnand %p1049_p9, %p1276_p10 }
 0x1f3   : > { %p1057_p4 = por %p1056_p7, %p1055_p3 }
 0x1f4   : > { %p1051_p2 = pneg %p1050_p1 }
 0x1f6   : > { %p1058_p13 = pnand %p1057_p4, %p1051_p2 }
 0x1f8   : > { %1061 = shalt.err (!%p1058_p13)
}
 0x1f9   : > { %s1062_s15 = scalar_lea.hbm %s1448_s28, 512  ;;  %s1066_s21 = scalar_lea.hbm %s1505_s5, 1024 }
 0x1fa   : > { %p1063_p6 = scmp.ne.s32.totalorder %s1448_s28, %s1062_s15  ;;  %p1067_p11 = scmp.lt.u32.totalorder %s1448_s28, %s1505_s5 }
 0x1fb   : > { %p1068_p0 = scmp.lt.u32.totalorder %s1066_s21, %s1062_s15  ;;  %p1070_p9 = scmp.lt.u32.totalorder %s1062_s15, %s1448_s28 }
 0x1fc   : > { %p1064_p8 = pnand %p1063_p6, %p1276_p10 }
 0x1fd   : > { %p1069_p5 = por %p1068_p0, %p1067_p11 }
 0x1fe   : > { %p1065_p12 = pneg %p1064_p8 }
 0x1ff   : > { %p1071_p1 = por %p1070_p9, %p1069_p5 }
 0x201   : > { %p1072_p2 = pnand %p1071_p1, %p1065_p12 }
 0x203   : > { %1075 = shalt.err (!%p1072_p2)
}
 0x204   : > { %852 = dma.vmem_to_hbm [thread:$0]  (%p1276_p10), %s1441_s0, 512, %s1448_s28, %s1411_s6, %s1148_s10, %s1148_s10, %s1149_s12  }
 0x205 PF: > { %s633_s26 = sand.u32 1, %s1118_s18   ;;  %p1525_p3 = scmp.ne.s32.totalorder %s1512_s27, 0 }
 0x206   : > { %p1526_p7 = scmp.ge.s32.totalorder %s1138_s23, 2  ;;  %s634_s16 = scalar_lea.sflag [#allocation4], %s633_s26 }
 0x208   : > { %p865_p4 = pnand %p1526_p7, %p1525_p3 }
 0x20a   : > { %1109 = dma.done.wait (!%p865_p4), %s634_s16, 512  }
 0x20b   : > { %1111 = vsyncadd (!%p865_p4), %s634_s16, 4294966784  ;;  %s1527_s11 = sadd.s32 4294967294, %s1138_s23  }
 0x20c   : > { %s642_s17 = sand.u32 1, %s1527_s11  }
 0x20d   : > { %s643_s30 = scalar_lea.sflag [#allocation9], %s642_s17 }
 0x20e   : > { %1113 = dma.done.wait (!%p865_p4), %s643_s30, 1024  }
 0x20f   : > { %1115 = vsyncadd (!%p865_p4), %s643_s30, 4294966272  ;;  %s26_s23 = sadd.s32 1, %s1138_s23   ;;  %s1528_s18 = smov %s1122_s19 }
 0x210   : > { %p23_p10 = scmp.ge.s32.totalorder %s26_s23, 4   ;;  %s1529_s19 = smov %s1126_s20 }
 0x211   : > { %s1530_s20 = smov %s1285_s13  ;;  %s1531_s21 = smov %s1134_s22 }
 0x212   : > { %s1532_s22 = smov %s1534_s7  ;;  %25 = sbr.rel (!%p23_p10) target bundleno = 11 (0xb), region = 113 }
 0x219   :  { %657 = vsyncpa [#allocation3], 1 }
 0x21a   :  { %659 = vsyncpa [#allocation3 + $0x1], 1 }
 0x21b   :  { %660 = vsyncpa [#allocation6], 1 }
 0x21c   :  { %661 = vsyncpa [#allocation4], 1 }
 0x21d   :  { %663 = vsyncpa [#allocation4 + $0x1], 1 }
 0x21e   :  { %664 = vsyncpa [#allocation9], 1 }
 0x21f   :  { %666 = vsyncpa [#allocation9 + $0x1], 1 }

</bundles_post_ra>
